<compile_context>
chip_gen: v7x
topology: tpu7x:2x2x1
jax: 0.10.0
libtpu: 0.0.40
codegen_flags: <defaults>
</compile_context>

<pallas_src>
import functools

import jax
import jax.numpy as jnp
from jax.experimental import pallas as pl
from jax.experimental.pallas import tpu as pltpu

BLOCK_SIZE = 64           # self.block_size in the module
FUSED = 2 * BLOCK_SIZE    # 128 lanes: policy half | value half


def _round_up(x, m):
    return (x + m - 1) // m * m


def _fused_kernel(num_blocks, compute_dtype,
                  x_ref, w_in_ref, w_blk_ref, w_ext_ref, w_out_ref, aux_ref,
                  out_ref):
    # aux: (8,128) f32 = [b_in; b_blk; b_ext; b_out; policy-lane mask; 0; 0; 0]
    aux = aux_ref[...]
    b_in, b_blk, b_ext, b_out = aux[0:1, :], aux[1:2, :], aux[2:3, :], aux[3:4, :]
    pmask = aux[4:5, :]   # 1.0 on lanes 0:64 (policy), 0.0 on lanes 64:128

    def linear(h, w, b):
        return jnp.dot(h.astype(compute_dtype), w,
                       preferred_element_type=jnp.float32) + b

    # Input layer: (TILE_B, F) @ (F, 128), f32 accumulate.
    h = jnp.maximum(linear(x_ref[...], w_in_ref[...], b_in), 0.0)

    # Shared repeated block, applied (num_blocks - 1) times to BOTH halves
    # (block-diagonal weights). Weights hoisted once outside the loop.
    n_rep = num_blocks - 1
    if n_rep > 0:
        w_blk = w_blk_ref[...]
        if n_rep <= 8:
            for _ in range(n_rep):
                h = jnp.maximum(linear(h, w_blk, b_blk), 0.0)
        else:
            h = jax.lax.fori_loop(
                0, n_rep,
                lambda _, hh: jnp.maximum(linear(hh, w_blk, b_blk), 0.0),
                h, unroll=2)

    # Value net's EXTRA shared block: fused matmul with blockdiag(0, wvb).
    # The policy half of h_ext is exactly zero (zero weights + zero bias, h is
    # finite), so one FMA with the precomputed policy-lane mask reproduces
    # "apply wvb to the value half only" exactly, in any MXU precision mode.
    h_ext = jnp.maximum(linear(h, w_ext_ref[...], b_ext), 0.0)
    h = h * pmask + h_ext

    # Fused output layer + tanh; single lane-dense 128-wide store.
    out_ref[...] = jnp.tanh(linear(h, w_out_ref[...], b_out)).astype(out_ref.dtype)


def scalable_network_forward_fused(features, params, num_blocks=2,
                                   tile_b=4096, use_bf16=True, out_dtype=None):
    """ScalableNetwork forward, returns the fused (B, 128) latent slab
    (lanes 0:64 = policy latent, lanes 64:128 = value latent)."""
    assert num_blocks >= 1
    B, F = features.shape
    bs = BLOCK_SIZE
    f32 = jnp.float32
    compute_dtype = jnp.bfloat16 if use_bf16 else jnp.float32
    out_dtype = jnp.dtype(out_dtype) if out_dtype is not None else jnp.dtype(f32)

    # ---- wrapper-side weight packing (layout plumbing, no in-kernel shuffles)
    def blockdiag(a, b):
        za = jnp.zeros((a.shape[0], b.shape[1]), f32)
        zb = jnp.zeros((b.shape[0], a.shape[1]), f32)
        return jnp.concatenate(
            [jnp.concatenate([a, za], axis=1),
             jnp.concatenate([zb, b], axis=1)], axis=0)

    w_in = jnp.concatenate([params["wpi"], params["wvi"]], axis=1)       # (F,128)
    w_blk = blockdiag(params["wpb"], params["wvb"])                      # (128,128)
    w_ext = blockdiag(jnp.zeros((bs, bs), f32), params["wvb"])           # 0 | value blk
    w_out = blockdiag(params["wpo"], params["wvo"])
    w_in, w_blk, w_ext, w_out = [w.astype(compute_dtype)
                                 for w in (w_in, w_blk, w_ext, w_out)]

    # Biases stay f32 (added to the f32 accumulator). Pack the four (1,128)
    # biases plus the policy-lane mask into a single (8,128) resident tile.
    z64 = jnp.zeros((1, bs), f32)
    aux = jnp.concatenate([
        jnp.concatenate([params["bpi"], params["bvi"]], axis=1),   # row 0: b_in
        jnp.concatenate([params["bpb"], params["bvb"]], axis=1),   # row 1: b_blk
        jnp.concatenate([z64,            params["bvb"]], axis=1),  # row 2: b_ext
        jnp.concatenate([params["bpo"], params["bvo"]], axis=1),   # row 3: b_out
        jnp.concatenate([jnp.ones((1, bs), f32), z64], axis=1),    # row 4: pmask
        jnp.zeros((3, FUSED), f32),                                # rows 5..7
    ], axis=0)

    # Features streamed in the compute dtype (halves the input HBM stream on
    # the bf16 path and removes an in-kernel full-tile cast).
    x = features.astype(compute_dtype)

    # ---- batch tiling / VMEM budget -----------------------------------------
    in_bytes = jnp.dtype(compute_dtype).itemsize
    out_bytes = out_dtype.itemsize
    # Resident weights/biases (double-buffered by the pipeline).
    w_bytes = 2 * (w_in.size + w_blk.size + w_ext.size + w_out.size) * in_bytes \
              + 2 * aux.size * 4
    # Per-row: 2x input buffer + 2x output buffer + ~4 f32 (.,128) temporaries.
    row_bytes = 2 * F * in_bytes + 2 * FUSED * out_bytes + 4 * FUSED * 4

    try:
        vmem_cap = int(pltpu.get_tpu_info().vmem_capacity_bytes)
    except Exception:
        vmem_cap = 64 << 20                            # conservative (v7x per-TC)
    vmem_ceiling = min((vmem_cap * 3) // 4, 96 << 20)  # leave compiler headroom

    g = 16 if use_bf16 else 8                          # sublane granularity
    avail = max(vmem_ceiling - w_bytes - (2 << 20), 0)
    max_rows = max(g, (avail // row_bytes) // g * g)
    req = max(g, (min(int(tile_b), max_rows) // g) * g)

    if B <= g:
        tile_b = B                                     # single full-array block
    else:
        # Aim for >= 2 roughly equal grid steps so both v7x TCs get work.
        tile_b = min(req, max(g, _round_up(pl.cdiv(B, 2), g)))
    grid = (pl.cdiv(B, tile_b),)                       # ragged last tile, no jnp.pad

    def resident(shape):  # weights/biases: same block at every grid step
        return pl.BlockSpec(shape, lambda i: (0, 0))

    in_specs = [
        pl.BlockSpec((tile_b, F), lambda i: (i, 0)),   # streamed features
        resident((F, FUSED)),                          # w_in
        resident((FUSED, FUSED)),                      # w_blk
        resident((FUSED, FUSED)),                      # w_ext
        resident((FUSED, FUSED)),                      # w_out
        resident((8, FUSED)),                          # packed biases + mask
    ]
    out_specs = pl.BlockSpec((tile_b, FUSED), lambda i: (i, 0))

    cost = pl.CostEstimate(
        flops=2 * B * FUSED * (F + (num_blocks + 1) * FUSED),
        transcendentals=B * FUSED,                     # tanh
        bytes_accessed=B * F * in_bytes + B * FUSED * out_bytes + w_bytes // 2,
    )

    # Only raise the scoped VMEM limit when the footprint actually needs it.
    cp_kwargs = {"dimension_semantics": ("parallel",)}
    # TODO(synk): use pltpu.CORE_PARALLEL on v7x toolchains where plain
    # "parallel" does not shard the batch grid across both TensorCores.
    footprint = w_bytes + tile_b * row_bytes
    if footprint > (12 << 20):
        cp_kwargs["vmem_limit_bytes"] = int(min(vmem_ceiling, footprint + (8 << 20)))

    kernel = functools.partial(_fused_kernel, num_blocks, compute_dtype)

    out = pl.pallas_call(
        kernel,
        out_shape=jax.ShapeDtypeStruct((B, FUSED), out_dtype),
        grid=grid,
        in_specs=in_specs,
        out_specs=out_specs,
        cost_estimate=cost,
        compiler_params=pltpu.CompilerParams(**cp_kwargs),
    )(x, w_in, w_blk, w_ext, w_out, aux)
    return out


def scalable_network_forward(features, params, num_blocks=2,
                             tile_b=4096, use_bf16=True, out_dtype=None):
    """Returns (policy_latent, value_latent), each (B, 64).

    NOTE: splitting the fused slab costs an extra HBM read+write of the
    output; prefer scalable_network_forward_fused and consume lanes 0:64 /
    64:128 directly downstream when possible."""
    out = scalable_network_forward_fused(features, params, num_blocks,
                                         tile_b, use_bf16, out_dtype)
    return out[:, :BLOCK_SIZE], out[:, BLOCK_SIZE:]


def init_params(key, feature_dim, block_size=BLOCK_SIZE):
    """Deterministic synthetic parameter init (mimics nn.Linear shapes)."""
    ks = jax.random.split(key, 12)

    def w(k, fan_in, fan_out):
        bound = 1.0 / jnp.sqrt(fan_in)
        return jax.random.uniform(k, (fan_in, fan_out), jnp.float32, -bound, bound)

    def b(k, fan_in, fan_out):
        bound = 1.0 / jnp.sqrt(fan_in)
        return jax.random.uniform(k, (1, fan_out), jnp.float32, -bound, bound)

    return {
        # policy net
        "wpi": w(ks[0], feature_dim, block_size), "bpi": b(ks[1], feature_dim, block_size),
        "wpb": w(ks[2], block_size, block_size),  "bpb": b(ks[3], block_size, block_size),
        "wpo": w(ks[4], block_size, block_size),  "bpo": b(ks[5], block_size, block_size),
        # value net
        "wvi": w(ks[6], feature_dim, block_size), "bvi": b(ks[7], feature_dim, block_size),
        "wvb": w(ks[8], block_size, block_size),  "bvb": b(ks[9], block_size, block_size),
        "wvo": w(ks[10], block_size, block_size), "bvo": b(ks[11], block_size, block_size),
    }


def reference_forward(features, p, num_blocks=2):
    """Pure-JAX reference (faithful to the PyTorch module)."""
    x = features
    h = jnp.maximum(x @ p["wpi"] + p["bpi"], 0.0)
    for _ in range(num_blocks - 1):
        h = jnp.maximum(h @ p["wpb"] + p["bpb"], 0.0)
    pol = jnp.tanh(h @ p["wpo"] + p["bpo"])

    h = jnp.maximum(x @ p["wvi"] + p["bvi"], 0.0)
    for _ in range(num_blocks):
        h = jnp.maximum(h @ p["wvb"] + p["bvb"], 0.0)
    val = jnp.tanh(h @ p["wvo"] + p["bvo"])
    return pol, val


if __name__ == "__main__":
    key = jax.random.PRNGKey(0)
    k1, k2, k3 = jax.random.split(key, 3)

    # ---- Test 1: f32 path (use_bf16=False), tight tolerance ------------------
    B, F, NB = 8, 32, 2
    feats = jax.random.normal(k1, (B, F), jnp.float32)
    params = init_params(k2, F)

    pol, val = scalable_network_forward(feats, params, num_blocks=NB, use_bf16=False)
    jax.block_until_ready((pol, val))
    pol_r, val_r = reference_forward(feats, params, num_blocks=NB)
    assert pol.shape == (B, BLOCK_SIZE) and val.shape == (B, BLOCK_SIZE)
    assert jnp.allclose(pol, pol_r, atol=1e-4, rtol=1e-4)
    assert jnp.allclose(val, val_r, atol=1e-4, rtol=1e-4)

    # ---- Test 2: multi-tile ragged batch, default bf16 streams ---------------
    B2, F2, NB2 = 20, 48, 3
    feats2 = jax.random.normal(k3, (B2, F2), jnp.float32)
    params2 = init_params(jax.random.fold_in(k2, 1), F2)
    pol2, val2 = scalable_network_forward(feats2, params2, num_blocks=NB2, tile_b=8)
    jax.block_until_ready((pol2, val2))
    pol2_r, val2_r = reference_forward(feats2, params2, num_blocks=NB2)
    assert pol2.shape == (B2, BLOCK_SIZE) and val2.shape == (B2, BLOCK_SIZE)
    assert jnp.allclose(pol2, pol2_r, atol=7.5e-2)
    assert jnp.allclose(val2, val2_r, atol=7.5e-2)

    # ---- Test 3: fused slab output in bf16 (output-stream roofline win) ------
    fused = scalable_network_forward_fused(feats, params, num_blocks=NB,
                                           out_dtype=jnp.bfloat16)
    jax.block_until_ready(fused)
    assert fused.shape == (B, FUSED) and fused.dtype == jnp.bfloat16
    assert jnp.allclose(fused[:, :BLOCK_SIZE].astype(jnp.float32), pol_r, atol=7.5e-2)
    assert jnp.allclose(fused[:, BLOCK_SIZE:].astype(jnp.float32), val_r, atol=7.5e-2)

    print("KERNEL_OK")
</pallas_src>

<mosaic_0001>
module attributes {stable_mosaic.version = 11 : i64} {
  func.func @_fused_kernel(%arg0: i32, %arg1: memref<8x32xf32, #tpu.memory_space<vmem>>, %arg2: memref<32x128xf32, #tpu.memory_space<vmem>>, %arg3: memref<128x128xf32, #tpu.memory_space<vmem>>, %arg4: memref<128x128xf32, #tpu.memory_space<vmem>>, %arg5: memref<128x128xf32, #tpu.memory_space<vmem>>, %arg6: memref<8x128xf32, #tpu.memory_space<vmem>>, %arg7: memref<8x128xf32, #tpu.memory_space<vmem>>) attributes {dimension_semantics = [#tpu.dimension_semantics<parallel>], iteration_bounds = array<i64: 1>, scalar_prefetch = 0 : i64, scratch_operands = 0 : i64, tpu.core_type = #tpu.core_type<tc>, window_params = [{transform_indices = @transform_0, window_bounds = array<i64: 8, 32>}, {pipeline_mode = #tpu.pipeline_mode<synchronous>, transform_indices = @transform_1, window_bounds = array<i64: 32, 128>}, {pipeline_mode = #tpu.pipeline_mode<synchronous>, transform_indices = @transform_2, window_bounds = array<i64: 128, 128>}, {pipeline_mode = #tpu.pipeline_mode<synchronous>, transform_indices = @transform_3, window_bounds = array<i64: 128, 128>}, {pipeline_mode = #tpu.pipeline_mode<synchronous>, transform_indices = @transform_4, window_bounds = array<i64: 128, 128>}, {pipeline_mode = #tpu.pipeline_mode<synchronous>, transform_indices = @transform_5, window_bounds = array<i64: 8, 128>}, {transform_indices = @transform_6, window_bounds = array<i64: 8, 128>}]} {
    %c0 = arith.constant 0 : index
    %c0_0 = arith.constant 0 : index
    %0 = vector.load %arg6[%c0, %c0_0] : memref<8x128xf32, #tpu.memory_space<vmem>>, vector<8x128xf32>
    %1 = vector.extract_strided_slice %0 {offsets = [0, 0], sizes = [1, 128], strides = [1, 1]} : vector<8x128xf32> to vector<1x128xf32>
    %2 = vector.extract_strided_slice %0 {offsets = [1, 0], sizes = [1, 128], strides = [1, 1]} : vector<8x128xf32> to vector<1x128xf32>
    %3 = vector.extract_strided_slice %0 {offsets = [2, 0], sizes = [1, 128], strides = [1, 1]} : vector<8x128xf32> to vector<1x128xf32>
    %4 = vector.extract_strided_slice %0 {offsets = [3, 0], sizes = [1, 128], strides = [1, 1]} : vector<8x128xf32> to vector<1x128xf32>
    %5 = vector.extract_strided_slice %0 {offsets = [4, 0], sizes = [1, 128], strides = [1, 1]} : vector<8x128xf32> to vector<1x128xf32>
    %c0_1 = arith.constant 0 : index
    %c0_2 = arith.constant 0 : index
    %6 = vector.load %arg1[%c0_1, %c0_2] : memref<8x32xf32, #tpu.memory_space<vmem>>, vector<8x32xf32>
    %c0_3 = arith.constant 0 : index
    %c0_4 = arith.constant 0 : index
    %7 = vector.load %arg2[%c0_3, %c0_4] : memref<32x128xf32, #tpu.memory_space<vmem>>, vector<32x128xf32>
    %cst = arith.constant dense<0.000000e+00> : vector<8x128xf32>
    %8 = tpu.matmul %6, %7, %cst {dimension_numbers = #tpu.dot_dimension_numbers<[1], [0], [0], [1], [0, 0, 1, 1], [], []>} : vector<8x32xf32>, vector<32x128xf32>, vector<8x128xf32> -> vector<8x128xf32>
    %9 = vector.broadcast %1 : vector<1x128xf32> to vector<8x128xf32>
    %10 = arith.addf %8, %9 : vector<8x128xf32>
    %cst_5 = arith.constant 0.000000e+00 : f32
    %11 = vector.broadcast %cst_5 : f32 to vector<8x128xf32>
    %12 = arith.maximumf %10, %11 : vector<8x128xf32>
    %c0_6 = arith.constant 0 : index
    %c0_7 = arith.constant 0 : index
    %13 = vector.load %arg3[%c0_6, %c0_7] : memref<128x128xf32, #tpu.memory_space<vmem>>, vector<128x128xf32>
    %cst_8 = arith.constant dense<0.000000e+00> : vector<8x128xf32>
    %14 = tpu.matmul %12, %13, %cst_8 {dimension_numbers = #tpu.dot_dimension_numbers<[1], [0], [0], [1], [0, 0, 1, 1], [], []>} : vector<8x128xf32>, vector<128x128xf32>, vector<8x128xf32> -> vector<8x128xf32>
    %15 = vector.broadcast %2 : vector<1x128xf32> to vector<8x128xf32>
    %16 = arith.addf %14, %15 : vector<8x128xf32>
    %cst_9 = arith.constant 0.000000e+00 : f32
    %17 = vector.broadcast %cst_9 : f32 to vector<8x128xf32>
    %18 = arith.maximumf %16, %17 : vector<8x128xf32>
    %c0_10 = arith.constant 0 : index
    %c0_11 = arith.constant 0 : index
    %19 = vector.load %arg4[%c0_10, %c0_11] : memref<128x128xf32, #tpu.memory_space<vmem>>, vector<128x128xf32>
    %cst_12 = arith.constant dense<0.000000e+00> : vector<8x128xf32>
    %20 = tpu.matmul %18, %19, %cst_12 {dimension_numbers = #tpu.dot_dimension_numbers<[1], [0], [0], [1], [0, 0, 1, 1], [], []>} : vector<8x128xf32>, vector<128x128xf32>, vector<8x128xf32> -> vector<8x128xf32>
    %21 = vector.broadcast %3 : vector<1x128xf32> to vector<8x128xf32>
    %22 = arith.addf %20, %21 : vector<8x128xf32>
    %cst_13 = arith.constant 0.000000e+00 : f32
    %23 = vector.broadcast %cst_13 : f32 to vector<8x128xf32>
    %24 = arith.maximumf %22, %23 : vector<8x128xf32>
    %25 = vector.broadcast %5 : vector<1x128xf32> to vector<8x128xf32>
    %26 = arith.mulf %18, %25 : vector<8x128xf32>
    %27 = arith.addf %26, %24 : vector<8x128xf32>
    %c0_14 = arith.constant 0 : index
    %c0_15 = arith.constant 0 : index
    %28 = vector.load %arg5[%c0_14, %c0_15] : memref<128x128xf32, #tpu.memory_space<vmem>>, vector<128x128xf32>
    %cst_16 = arith.constant dense<0.000000e+00> : vector<8x128xf32>
    %29 = tpu.matmul %27, %28, %cst_16 {dimension_numbers = #tpu.dot_dimension_numbers<[1], [0], [0], [1], [0, 0, 1, 1], [], []>} : vector<8x128xf32>, vector<128x128xf32>, vector<8x128xf32> -> vector<8x128xf32>
    %30 = vector.broadcast %4 : vector<1x128xf32> to vector<8x128xf32>
    %31 = arith.addf %29, %30 : vector<8x128xf32>
    %32 = math.tanh %31 : vector<8x128xf32>
    %c0_17 = arith.constant 0 : index
    %c0_18 = arith.constant 0 : index
    %33 = vector.load %arg7[%c0_17, %c0_18] : memref<8x128xf32, #tpu.memory_space<vmem>>, vector<8x128xf32>
    tpu.vector_store %arg7[%c0_17, %c0_18], %32 {strides = array<i32>} : memref<8x128xf32, #tpu.memory_space<vmem>>, vector<8x128xf32>,
    return
  }
  func.func @transform_0(%arg0: i32) -> (i32, i32) {
    %c0_i32 = arith.constant 0 : i32
    %c0_i32_0 = arith.constant 0 : i32
    return %arg0, %c0_i32 : i32, i32
  }
  func.func @transform_1(%arg0: i32) -> (i32, i32) {
    %c0_i32 = arith.constant 0 : i32
    %c0_i32_0 = arith.constant 0 : i32
    %c0_i32_1 = arith.constant 0 : i32
    return %c0_i32, %c0_i32_0 : i32, i32
  }
  func.func @transform_2(%arg0: i32) -> (i32, i32) {
    %c0_i32 = arith.constant 0 : i32
    %c0_i32_0 = arith.constant 0 : i32
    %c0_i32_1 = arith.constant 0 : i32
    return %c0_i32, %c0_i32_0 : i32, i32
  }
  func.func @transform_3(%arg0: i32) -> (i32, i32) {
    %c0_i32 = arith.constant 0 : i32
    %c0_i32_0 = arith.constant 0 : i32
    %c0_i32_1 = arith.constant 0 : i32
    return %c0_i32, %c0_i32_0 : i32, i32
  }
  func.func @transform_4(%arg0: i32) -> (i32, i32) {
    %c0_i32 = arith.constant 0 : i32
    %c0_i32_0 = arith.constant 0 : i32
    %c0_i32_1 = arith.constant 0 : i32
    return %c0_i32, %c0_i32_0 : i32, i32
  }
  func.func @transform_5(%arg0: i32) -> (i32, i32) {
    %c0_i32 = arith.constant 0 : i32
    %c0_i32_0 = arith.constant 0 : i32
    %c0_i32_1 = arith.constant 0 : i32
    return %c0_i32, %c0_i32_0 : i32, i32
  }
  func.func @transform_6(%arg0: i32) -> (i32, i32) {
    %c0_i32 = arith.constant 0 : i32
    %c0_i32_0 = arith.constant 0 : i32
    return %arg0, %c0_i32 : i32, i32
  }
}

</mosaic_0001>

<bundles_post_ra>
// kernel: tpu_custom_call.1
= control target key start
LH: loop header
LB: loop body
LE: loop exit
PB: predicated region body
PF: predicated region fallthrough
CT: control target
= control target key end

     0   :  { %11 = vsyncpa [#allocation3], 0  ;;  %s1057_s0 = inlined_call_operand.hbm [shape: f32[8,32], index: 0, kind: input, shape index: {}]   ;;  %s1058_s1 = inlined_call_operand.hbm [shape: f32[32,128], index: 1, kind: input, shape index: {}]   ;;  %s1059_s2 = inlined_call_operand.hbm [shape: f32[128,128], index: 2, kind: input, shape index: {}]   ;;  %s1060_s3 = inlined_call_operand.hbm [shape: f32[128,128], index: 3, kind: input, shape index: {}]   ;;  %s1061_s4 = inlined_call_operand.hbm [shape: f32[128,128], index: 4, kind: input, shape index: {}]   ;;  %s1062_s5 = inlined_call_operand.vmem [shape: f32[8,128], index: 5, kind: input, shape index: {}]   ;;  %s1063_s6 = inlined_call_operand.hbm [shape: f32[8,128], index: 6, kind: output, shape index: {}]  }
   0x1   :  { %12 = vsyncpa [#allocation6], 0 }
   0x2   :  { %13 = vsyncpa [#allocation9], 0 }
   0x3   :  { %14 = vsyncpa [#allocation4], 0  ;;  %s876_s21 = smov [#allocation5]   ;;  %s736_s25 = scalar_lea.hbm %s1058_s1, 512 }
   0x4   :  { %s30_s22 = sshll.u32 %s876_s21, 4  ;;  %p737_p0 = scmp.ne.s32.totalorder %s1058_s1, %s736_s25  ;;  %s31_s22 = int_to_ptr.vmem [resolvable:$true] %s30_s22 }
   0x5   :  { %p740_p1 = scmp.lt.u32.totalorder %s736_s25, %s1058_s1 }
   0x7   :  { %p742_p2 = pnand %p740_p1, %p737_p0 }
   0x9   :  { %745 = shalt.err (!%p742_p2)
}
   0xa   :  { %s746_s30 = scalar_lea.vmem %s31_s22, 512  ;;  %p751_p4 = scmp.lt.s32.totalorder %s31_s22, %s31_s22 }
   0xb   :  { %p747_p3 = scmp.ne.s32.totalorder %s31_s22, %s746_s30  ;;  %p752_p5 = scmp.lt.s32.totalorder %s746_s30, %s746_s30 }
   0xd   :  { %p753_p6 = por %p752_p5, %p751_p4 }
   0xf   :  { %p754_p7 = pnand %p753_p6, %p747_p3 }
  0x11   :  { %757 = shalt.err (!%p754_p7)
}
  0x12   :  { %s877_s7 = smov 128   ;;  %s878_s8 = smov 8  }
  0x13   :  { %36 = dma.hbm_to_vmem [thread:$0]  %s1058_s1, 512, %s31_s22, [#allocation6], %s877_s7, %s877_s7, %s878_s8  }
  0x14   :  { %s879_s11 = smov [#allocation8]   ;;  %s880_s13 = smov [#allocation2]  }
  0x15   :  { %s54_s12 = sshll.u32 %s879_s11, 4  ;;  %s21_s14 = sshll.u32 %s880_s13, 4  ;;  %s55_s12 = int_to_ptr.vmem [resolvable:$true] %s54_s12  ;;  %s22_s14 = int_to_ptr.vmem [resolvable:$true] %s21_s14 }
  0x16   :  { %s758_s17 = scalar_lea.hbm %s1060_s3, 2048 }
  0x17   :  { %p759_p8 = scmp.ne.s32.totalorder %s1060_s3, %s758_s17  ;;  %p762_p9 = scmp.lt.u32.totalorder %s758_s17, %s1060_s3 }
  0x19   :  { %p764_p10 = pnand %p762_p9, %p759_p8 }
  0x1b   :  { %767 = shalt.err (!%p764_p10)
}
  0x1c   :  { %s768_s1 = scalar_lea.vmem %s55_s12, 2048  ;;  %p773_p12 = scmp.lt.s32.totalorder %s55_s12, %s55_s12 }
  0x1d   :  { %p769_p11 = scmp.ne.s32.totalorder %s55_s12, %s768_s1  ;;  %p774_p13 = scmp.lt.s32.totalorder %s768_s1, %s768_s1 }
  0x1f   :  { %p775_p0 = por %p774_p13, %p773_p12 }
  0x21   :  { %p776_p1 = pnand %p775_p0, %p769_p11 }
  0x23   :  { %779 = shalt.err (!%p776_p1)
}
  0x24   :  { %60 = dma.hbm_to_vmem [thread:$0]  %s1060_s3, 2048, %s55_s12, [#allocation9], %s877_s7, %s877_s7, %s878_s8  }
  0x25   :  { %s780_s26 = scalar_lea.hbm %s1057_s0, 128 }
  0x26   :  { %p781_p2 = scmp.ne.s32.totalorder %s1057_s0, %s780_s26  ;;  %p784_p3 = scmp.lt.u32.totalorder %s780_s26, %s1057_s0 }
  0x28   :  { %p786_p4 = pnand %p784_p3, %p781_p2 }
  0x2a   :  { %789 = shalt.err (!%p786_p4)
}
  0x2b   :  { %s790_s9 = scalar_lea.vmem %s22_s14, 128  ;;  %p795_p6 = scmp.lt.s32.totalorder %s22_s14, %s22_s14 }
  0x2c   :  { %p791_p5 = scmp.ne.s32.totalorder %s22_s14, %s790_s9  ;;  %p796_p7 = scmp.lt.s32.totalorder %s790_s9, %s790_s9 }
  0x2e   :  { %p797_p8 = por %p796_p7, %p795_p6 }
  0x30   :  { %p798_p9 = pnand %p797_p8, %p791_p5 }
  0x32   :  { %801 = shalt.err (!%p798_p9)
}
  0x33   :  { %24 = dma.hbm_to_vmem [thread:$0]  %s1057_s0, 128, %s22_s14, [#allocation3]  }
  0x34   :  { %s881_s11 = smov [#allocation7]   ;;  %s882_s13 = smov [#allocation10]  }
  0x35   :  { %s42_s12 = sshll.u32 %s881_s11, 4  ;;  %s66_s15 = sshll.u32 %s882_s13, 4  ;;  %s43_s12 = int_to_ptr.vmem [resolvable:$true] %s42_s12  ;;  %s67_s15 = int_to_ptr.vmem [resolvable:$true] %s66_s15 }
  0x36   :  { %s802_s18 = scalar_lea.hbm %s1059_s2, 2048 }
  0x37   :  { %p803_p10 = scmp.ne.s32.totalorder %s1059_s2, %s802_s18  ;;  %p806_p11 = scmp.lt.u32.totalorder %s802_s18, %s1059_s2 }
  0x39   :  { %p808_p12 = pnand %p806_p11, %p803_p10 }
  0x3b   :  { %811 = shalt.err (!%p808_p12)
}
  0x3c   :  { %s812_s0 = scalar_lea.vmem %s43_s12, 2048  ;;  %p817_p0 = scmp.lt.s32.totalorder %s43_s12, %s43_s12 }
  0x3d   :  { %p813_p13 = scmp.ne.s32.totalorder %s43_s12, %s812_s0  ;;  %p818_p1 = scmp.lt.s32.totalorder %s812_s0, %s812_s0 }
  0x3f   :  { %p819_p2 = por %p818_p1, %p817_p0 }
  0x41   :  { %p820_p3 = pnand %p819_p2, %p813_p13 }
  0x43   :  { %823 = shalt.err (!%p820_p3)
}
  0x44   :  { %48 = dma.hbm_to_vmem [thread:$0]  %s1059_s2, 2048, %s43_s12, [#allocation6], %s877_s7, %s877_s7, %s878_s8  }
  0x45   :  { %s824_s25 = scalar_lea.hbm %s1061_s4, 2048 }
  0x46   :  { %p825_p4 = scmp.ne.s32.totalorder %s1061_s4, %s824_s25  ;;  %p828_p5 = scmp.lt.u32.totalorder %s824_s25, %s1061_s4 }
  0x48   :  { %p830_p6 = pnand %p828_p5, %p825_p4 }
  0x4a   :  { %833 = shalt.err (!%p830_p6)
}
  0x4b   :  { %s834_s30 = scalar_lea.vmem %s67_s15, 2048  ;;  %p839_p8 = scmp.lt.s32.totalorder %s67_s15, %s67_s15 }
  0x4c   :  { %p835_p7 = scmp.ne.s32.totalorder %s67_s15, %s834_s30  ;;  %p840_p9 = scmp.lt.s32.totalorder %s834_s30, %s834_s30 }
  0x4e   :  { %p841_p10 = por %p840_p9, %p839_p8 }
  0x50   :  { %p842_p11 = pnand %p841_p10, %p835_p7 }
  0x52   :  { %845 = shalt.err (!%p842_p11)
}
  0x53   :  { %72 = dma.hbm_to_vmem [thread:$0]  %s1061_s4, 2048, %s67_s15, [#allocation9], %s877_s7, %s877_s7, %s878_s8  }
  0x54   :  { %868 = dma.done.wait [#allocation3], 128  }
  0x55   :  { %869 = vsyncadd [#allocation3], 4294967168 }
  0x56   :  { %870 = dma.done.wait [#allocation6], 2560  }
  0x57   :  { %871 = vsyncadd [#allocation6], 4294964736 }
  0x58   :  { %872 = dma.done.wait [#allocation9], 4096  }
  0x59   :  { %873 = vsyncadd [#allocation9], 4294963200  ;;  %v883_v0 = vmov 0.0|0.0   ;;  %vm884_vm0 = vmmov 0   ;;  %v885_v1 = vmov 0.0   ;;  %v92_v2 = vld [vmem:[#allocation5] sm:$0xff]  ;;  %v96_v54 = vlaneseq }
  0x5a   :  { %645 = vmatprep.subr.bf16.mxu0 %v883_v0  ;;  %537 = vmatprep.mubr.msk.f32.mxu0 %vm884_vm0, %v885_v1  ;;  %v93_v3 = vld [vmem:[#allocation5 + $0x8] sm:$0xff]  ;;  %v94_v4 = vld [vmem:[#allocation5 + $0x10] sm:$0xff]  ;;  %v95_v6 = vld [vmem:[#allocation5 + $0x18] sm:$0xff]  ;;  %vm100_vm1 = vcmask 261120  }
  0x5b   :  { %651 = vmatprep.subr.bf16.mxu1 %v883_v0  ;;  %572 = vmatprep.mubr.msk.f32.mxu1 %vm884_vm0, %v885_v1  ;;  %v646_v5 = vpack.c.bf16 %v93_v3, %v92_v2  ;;  %v175_v7 = vld [vmem:[#allocation7] sm:$0xff]  ;;  %v176_v8 = vld [vmem:[#allocation7 + $0x8] sm:$0xff]  ;;  %v177_v9 = vld [vmem:[#allocation7 + $0x10] sm:$0xff]  ;;  %v649_v11 = vpack.c.bf16 %v95_v6, %v94_v4  ;;  %v1019_v55 = vshrl.u32 %v96_v54, 7 }
  0x5c   :  { %v178_v10 = vld [vmem:[#allocation7 + $0x18] sm:$0xff]  ;;  %v652_v12 = vpack.c.bf16 %v176_v8, %v175_v7  ;;  %v179_v14 = vld [vmem:[#allocation7 + $0x20] sm:$0xff]  ;;  %v180_v15 = vld [vmem:[#allocation7 + $0x28] sm:$0xff] }
  0x5d   :  { %647 = vmatpush3.bf16.msra.mxu0 %v646_v5  ;;  %v655_v13 = vpack.c.bf16 %v178_v10, %v177_v9  ;;  %v91_v16 = vld [vmem:[#allocation2] sm:$0xff]  ;;  %v658_v17 = vpack.c.bf16 %v180_v15, %v179_v14  ;;  %v181_v18 = vld [vmem:[#allocation7 + $0x30] sm:$0xff]  ;;  %v183_v21 = vld [vmem:[#allocation7 + $0x40] sm:$0xff]  ;;  %v98_v56 = vsub.s32 0, %v1019_v55 }
  0x5e   :  { %648 = vmatprep.subr.bf16.mxu0 %v883_v0  ;;  %653 = vmatpush3.bf16.msra.mxu1 %v652_v12  ;;  %v182_v19 = vld [vmem:[#allocation7 + $0x38] sm:$0xff]  ;;  %v184_v22 = vld [vmem:[#allocation7 + $0x48] sm:$0xff]  ;;  %v185_v24 = vld [vmem:[#allocation7 + $0x50] sm:$0xff] }
  0x5f   :  { %654 = vmatprep.subr.bf16.mxu1 %v883_v0  ;;  %v661_v20 = vpack.c.bf16 %v182_v19, %v181_v18  ;;  %v664_v23 = vpack.c.bf16 %v184_v22, %v183_v21  ;;  %v186_v25 = vld [vmem:[#allocation7 + $0x58] sm:$0xff]  ;;  %v187_v27 = vld [vmem:[#allocation7 + $0x60] sm:$0xff]  ;;  %v188_v28 = vld [vmem:[#allocation7 + $0x68] sm:$0xff]  ;;  %v193_v21 = vsub.s32 1, %v1019_v55 }
  0x60   :  { %v667_v26 = vpack.c.bf16 %v186_v25, %v185_v24  ;;  %v670_v29 = vpack.c.bf16 %v188_v28, %v187_v27  ;;  %v189_v30 = vld [vmem:[#allocation7 + $0x70] sm:$0xff]  ;;  %v190_v31 = vld [vmem:[#allocation7 + $0x78] sm:$0xff]  ;;  %v266_v33 = vld [vmem:[#allocation8] sm:$0xff] }
  0x61   :  { %650 = vmatpush3.bf16.msra.mxu0 %v649_v11  ;;  %v673_v32 = vpack.c.bf16 %v190_v31, %v189_v30  ;;  %v267_v34 = vld [vmem:[#allocation8 + $0x8] sm:$0xff]  ;;  %v268_v35 = vld [vmem:[#allocation8 + $0x10] sm:$0xff]  ;;  %v269_v37 = vld [vmem:[#allocation8 + $0x18] sm:$0xff] }
  0x62   :  { %675 = vmatprep.subr.bf16.mxu0 %v883_v0  ;;  %656 = vmatpush3.bf16.msra.mxu1 %v655_v13  ;;  %v676_v36 = vpack.c.bf16 %v267_v34, %v266_v33  ;;  %v679_v38 = vpack.c.bf16 %v269_v37, %v268_v35  ;;  %v270_v39 = vld [vmem:[#allocation8 + $0x20] sm:$0xff]  ;;  %v271_v40 = vld [vmem:[#allocation8 + $0x28] sm:$0xff]  ;;  %v272_v42 = vld [vmem:[#allocation8 + $0x30] sm:$0xff]  ;;  %v284_v33 = vsub.s32 2, %v1019_v55  ;;  %v359_v34 = vsub.s32 4, %v1019_v55 }
  0x63   :  { %657 = vmatprep.subr.bf16.mxu1 %v883_v0  ;;  %v682_v41 = vpack.c.bf16 %v271_v40, %v270_v39  ;;  %v273_v43 = vld [vmem:[#allocation8 + $0x38] sm:$0xff]  ;;  %v274_v45 = vld [vmem:[#allocation8 + $0x40] sm:$0xff]  ;;  %v275_v46 = vld [vmem:[#allocation8 + $0x48] sm:$0xff] }
  0x64   :  { %538 = vmatmul.mubr.msk.f32.vlgmr.msra.gmra.mrb[0].mxu0 %vm100_vm1, %v91_v16  ;;  %v685_v44 = vpack.c.bf16 %v273_v43, %v272_v42  ;;  %v688_v47 = vpack.c.bf16 %v275_v46, %v274_v45  ;;  %v276_v48 = vld [vmem:[#allocation8 + $0x50] sm:$0xff]  ;;  %v277_v49 = vld [vmem:[#allocation8 + $0x58] sm:$0xff]  ;;  %v278_v51 = vld [vmem:[#allocation8 + $0x60] sm:$0xff] }
  0x65   :  { %607 = vmatprep.mubr.msk.f32.mxu0 %vm884_vm0, %v885_v1  ;;  %677 = vmatpush3.bf16.msra.mxu0 %v676_v36  ;;  %v691_v50 = vpack.c.bf16 %v277_v49, %v276_v48  ;;  %v279_v52 = vld [vmem:[#allocation8 + $0x68] sm:$0xff]  ;;  %v1025_v57 = vld [vmem:[%s1062_s5] sm:$0xff]  ;;  %v280_v63 = vld [vmem:[#allocation8 + $0x70] sm:$0xff]  ;;  %s886_s5 = smov [#allocation11]  }
  0x66   :  { %659 = vmatpush3.bf16.msra.mxu1 %v658_v17  ;;  %678 = vmatprep.subr.bf16.mxu0 %v883_v0  ;;  %v694_v53 = vpack.c.bf16 %v279_v52, %v278_v51  ;;  %v99_v58 = vrot.slane %v1025_v57, %v98_v56  ;;  %v281_v2 = vld [vmem:[#allocation8 + $0x78] sm:$0xff]  ;;  %v363_v4 = vld [vmem:[#allocation10] sm:$0xff]  ;;  %v364_v5 = vld [vmem:[#allocation10 + $0x8] sm:$0xff]  ;;  %v194_v22 = vrot.slane %v1025_v57, %v193_v21  ;;  %s461_s8 = sshll.u32 %s886_s5, 4  ;;  %s462_s8 = int_to_ptr.vmem [resolvable:$true] %s461_s8 }
  0x67   :  { %660 = vmatprep.subr.bf16.mxu1 %v883_v0  ;;  %v697_v3 = vpack.c.bf16 %v281_v2, %v280_v63  ;;  %v365_v6 = vld [vmem:[#allocation10 + $0x10] sm:$0xff]  ;;  %v700_v7 = vpack.c.bf16 %v364_v5, %v363_v4  ;;  %v366_v8 = vld [vmem:[#allocation10 + $0x18] sm:$0xff]  ;;  %v367_v10 = vld [vmem:[#allocation10 + $0x20] sm:$0xff]  ;;  %v285_v35 = vrot.slane %v1025_v57, %v284_v33  ;;  %v360_v36 = vrot.slane %v1025_v57, %v359_v34  ;;  %s846_s3 = scalar_lea.vmem %s462_s8, 128  ;;  %p851_p13 = scmp.lt.s32.totalorder %s462_s8, %s462_s8 }
  0x68   :  { %v703_v9 = vpack.c.bf16 %v366_v8, %v365_v6  ;;  %v368_v11 = vld [vmem:[#allocation10 + $0x28] sm:$0xff]  ;;  %v370_v13 = vld [vmem:[#allocation10 + $0x38] sm:$0xff]  ;;  %v371_v15 = vld [vmem:[#allocation10 + $0x40] sm:$0xff]  ;;  %p847_p12 = scmp.ne.s32.totalorder %s462_s8, %s846_s3  ;;  %p852_p0 = scmp.lt.s32.totalorder %s846_s3, %s846_s3 }
  0x69   :  { %680 = vmatpush3.bf16.msra.mxu0 %v679_v38  ;;  %v706_v12 = vpack.c.bf16 %v368_v11, %v367_v10  ;;  %v372_v16 = vld [vmem:[#allocation10 + $0x48] sm:$0xff]  ;;  %v373_v18 = vld [vmem:[#allocation10 + $0x50] sm:$0xff]  ;;  %v374_v19 = vld [vmem:[#allocation10 + $0x58] sm:$0xff] }
  0x6a   :  { %662 = vmatpush3.bf16.msra.mxu1 %v661_v20  ;;  %681 = vmatprep.subr.bf16.mxu0 %v883_v0  ;;  %v712_v17 = vpack.c.bf16 %v372_v16, %v371_v15  ;;  %v715_v20 = vpack.c.bf16 %v374_v19, %v373_v18  ;;  %v375_v27 = vld [vmem:[#allocation10 + $0x60] sm:$0xff]  ;;  %v376_v28 = vld [vmem:[#allocation10 + $0x68] sm:$0xff]  ;;  %v377_v30 = vld [vmem:[#allocation10 + $0x70] sm:$0xff]  ;;  %p853_p1 = por %p852_p0, %p851_p13 }
  0x6b   :  { %663 = vmatprep.subr.bf16.mxu1 %v883_v0  ;;  %v378_v31 = vld [vmem:[#allocation10 + $0x78] sm:$0xff] }
  0x6c   :  { %p854_p2 = pnand %p853_p1, %p847_p12 }
  0x6d   :  { %683 = vmatpush3.bf16.msra.mxu0 %v682_v41 }
  0x6e   :  { %665 = vmatpush3.bf16.msra.mxu1 %v664_v23  ;;  %684 = vmatprep.subr.bf16.mxu0 %v883_v0 }
  0x6f   :  { %666 = vmatprep.subr.bf16.mxu1 %v883_v0 }
  0x71   :  { %686 = vmatpush3.bf16.msra.mxu0 %v685_v44 }
  0x72   :  { %668 = vmatpush3.bf16.msra.mxu1 %v667_v26  ;;  %687 = vmatprep.subr.bf16.mxu0 %v883_v0 }
  0x73   :  { %669 = vmatprep.subr.bf16.mxu1 %v883_v0 }
  0x75   :  { %689 = vmatpush3.bf16.msra.mxu0 %v688_v47 }
  0x76   :  { %671 = vmatpush3.bf16.msra.mxu1 %v670_v29  ;;  %690 = vmatprep.subr.bf16.mxu0 %v883_v0  ;;  %v718_v29 = vpack.c.bf16 %v376_v28, %v375_v27 }
  0x77   :  { %672 = vmatprep.subr.bf16.mxu1 %v883_v0 }
  0x79   :  { %692 = vmatpush3.bf16.msra.mxu0 %v691_v50 }
  0x7a   :  { %674 = vmatpush3.bf16.msra.mxu1 %v673_v32  ;;  %693 = vmatprep.subr.bf16.mxu0 %v883_v0  ;;  %v721_v32 = vpack.c.bf16 %v378_v31, %v377_v30 }
  0x7b   :  { %699 = vmatprep.subr.bf16.mxu1 %v883_v0 }
  0x7d   :  { %695 = vmatpush3.bf16.msra.mxu0 %v694_v53 }
  0x7e   :  { %696 = vmatprep.subr.bf16.mxu0 %v883_v0 }
  0x81   :  { %698 = vmatpush3.bf16.msra.mxu0 %v697_v3 }
 0x137   :  { %v170_v59 = vpop.f32.mrb[0].mxu0 }
 0x138   :  { %v171_v60 = vadd.f32 %v170_v59, %v99_v58  ;;  %v539_v61 = vpop.f32.mrb[1].mxu0 }
 0x13a   :  { %v174_v62 = vmax.f32 %v171_v60, 0.0 }
 0x13c   :  { %573 = vmatmul.mubr.f32.vlgmr.msra.gmra.mrb[0].mxu1 %v174_v62 }
 0x13d   :  { %642 = vmatprep.mubr.msk.f32.mxu1 %vm884_vm0, %v885_v1  ;;  %701 = vmatpush3.bf16.msra.mxu1 %v700_v7  ;;  %v369_v1 = vld [vmem:[#allocation10 + $0x30] sm:$0xff] }
 0x13e   :  { %702 = vmatprep.subr.bf16.mxu1 %v883_v0  ;;  %v709_v14 = vpack.c.bf16 %v370_v13, %v369_v1 }
 0x141   :  { %704 = vmatpush3.bf16.msra.mxu1 %v703_v9 }
 0x142   :  { %705 = vmatprep.subr.bf16.mxu1 %v883_v0 }
 0x145   :  { %707 = vmatpush3.bf16.msra.mxu1 %v706_v12 }
 0x146   :  { %708 = vmatprep.subr.bf16.mxu1 %v883_v0 }
 0x149   :  { %710 = vmatpush3.bf16.msra.mxu1 %v709_v14 }
 0x14a   :  { %711 = vmatprep.subr.bf16.mxu1 %v883_v0 }
 0x14d   :  { %713 = vmatpush3.bf16.msra.mxu1 %v712_v17 }
 0x14e   :  { %714 = vmatprep.subr.bf16.mxu1 %v883_v0 }
 0x151   :  { %716 = vmatpush3.bf16.msra.mxu1 %v715_v20 }
 0x152   :  { %717 = vmatprep.subr.bf16.mxu1 %v883_v0 }
 0x155   :  { %719 = vmatpush3.bf16.msra.mxu1 %v718_v29 }
 0x156   :  { %720 = vmatprep.subr.bf16.mxu1 %v883_v0  ;;  %v381_v0 = vsub.s32 3, %v1019_v55 }
 0x158   :  { %v382_v43 = vrot.slane %v1025_v57, %v381_v0 }
 0x159   :  { %722 = vmatpush3.bf16.msra.mxu1 %v721_v32 }
 0x20f   :  { %v261_v23 = vpop.f32.mrb[0].mxu1 }
 0x210   :  { %v262_v24 = vadd.f32 %v261_v23, %v194_v22  ;;  %v574_v25 = vpop.f32.mrb[1].mxu1 }
 0x212   :  { %v265_v26 = vmax.f32 %v262_v24, 0.0 }
 0x214   :  { %608 = vmatmul.mubr.f32.vlgmr.msra.gmra.mrb[2].mxu0 %v265_v26  ;;  %v361_v40 = vmul.f32 %v360_v36, %v265_v26 }
 0x2e7   :  { %v352_v37 = vpop.f32.mrb[2].mxu0 }
 0x2e8   :  { %v353_v38 = vadd.f32 %v352_v37, %v285_v35  ;;  %v609_v39 = vpop.f32.mrb[3].mxu0 }
 0x2ea   :  { %v356_v41 = vmax.f32 %v353_v38, 0.0 }
 0x2ec   :  { %v362_v42 = vadd.f32 %v361_v40, %v356_v41 }
 0x2ee   :  { %643 = vmatmul.mubr.f32.vlgmr.msra.gmra.mrb[2].mxu1 %v362_v42 }
 0x3c1   :  { %v449_v44 = vpop.f32.mrb[2].mxu1 }
 0x3c2   :  { %v450_v45 = vadd.f32 %v449_v44, %v382_v43  ;;  %v644_v46 = vpop.f32.mrb[3].mxu1 }
 0x3c4   :  { %734 = vtanh.f32 %v450_v45 }
 0x3ce   :  { %v735_v47 = vpop.eup %734 }
 0x3cf   :  { %454 = vst [vmem:[#allocation11] sm:$0xff] %v735_v47 }
 0x3d0   :  { %857 = shalt.err (!%p854_p2)
}
 0x3d1   :  { %s858_s12 = scalar_lea.hbm %s1063_s6, 128 }
 0x3d2   :  { %p859_p3 = scmp.ne.s32.totalorder %s1063_s6, %s858_s12  ;;  %p862_p4 = scmp.lt.u32.totalorder %s858_s12, %s1063_s6 }
 0x3d4   :  { %p864_p5 = pnand %p862_p4, %p859_p3 }
 0x3d6   :  { %867 = shalt.err (!%p864_p5)
}
 0x3d7   :  { %464 = dma.vmem_to_hbm [thread:$0]  %s462_s8, 128, %s1063_s6, [#allocation4]  }
 0x3d8   :  { %874 = dma.done.wait [#allocation4], 128  }
 0x3d9   :  { %875 = vsyncadd [#allocation4], 4294967168 }
 0x3da   :  { %468 = vsyncpa [#allocation3], 1 }
 0x3db   :  { %469 = vsyncpa [#allocation6], 1 }
 0x3dc   :  { %470 = vsyncpa [#allocation9], 1 }
 0x3dd   :  { %471 = vsyncpa [#allocation4], 1 }

</bundles_post_ra>
